<compile_context>
chip_gen: v6e
topology: v6e:2x2x1
jax: 0.10.0
libtpu: 0.0.40
codegen_flags: <defaults>
</compile_context>

<pallas_src>
import functools

import jax
import jax.numpy as jnp
from jax.experimental import pallas as pl
from jax.experimental.pallas import tpu as pltpu


def _token_type_kernel(ids_ref, x_ref, emb_ref, o_ref, *, group, d_model,
                       num_types):
    tile_rows, gd = x_ref.shape
    ids = ids_ref[...]                                  # (tile_rows, group) i32

    # Per-lane token-type id: lane l of a grouped row belongs to token
    # group l // d_model.  Built with a small VPU select chain (broadcasts
    # only -- no reshape / gather / concat).
    if group > 1:
        lane = jax.lax.broadcasted_iota(jnp.int32, (tile_rows, gd), 1)
        ids_lane = ids[:, 0:1]
        for g in range(1, group):
            ids_lane = jnp.where(lane >= g * d_model, ids[:, g:g + 1], ids_lane)
    else:
        ids_lane = ids[:, 0:1]

    # T-way VPU select over the lane-tiled embedding rows
    # (emb_ref[t] == emb[t] repeated `group` times along the lane axis).
    gathered = emb_ref[0:1, :]
    for t in range(1, num_types):
        gathered = jnp.where(ids_lane == t, emb_ref[t:t + 1, :], gathered)

    o_ref[...] = x_ref[...] + gathered.astype(o_ref.dtype)


@functools.partial(jax.jit, static_argnames=("tile_rows",))
def token_type_encoding(frames_actions, token_type_ids, emb_weight, *,
                        tile_rows=None):
    """frames_actions: [B,S,D] float; token_type_ids: [B,S] int; emb_weight: [T,D]."""
    B, S, D = frames_actions.shape
    T = emb_weight.shape[0]
    N = B * S
    itemsize = jnp.dtype(frames_actions.dtype).itemsize

    # Fold G consecutive tokens into the lane axis when D < 128.
    if D % 128 == 0:
        G = 1
    elif 128 % D == 0:
        G = 128 // D
    else:
        G = 1  # TODO(synk): odd d_model falls back to a sub-128-lane last dim.
    GD = G * D

    rows_needed = pl.cdiv(N, G)

    if tile_rows is None:
        # ~2 MiB x-tile budget, capped at 1024 rows (>=85% of HBM roofline per
        # measured BlockSpec data); double-buffered in/out/ids stay well under
        # v7x's 32 MiB scoped VMEM.
        budget_rows = max(8, (2 * 1024 * 1024) // (GD * itemsize))
        tile_rows = min(1024, budget_rows)
    if rows_needed <= tile_rows:
        tile_rows = rows_needed                 # single full-extent block
    else:
        tile_rows = max(8, (tile_rows // 8) * 8)

    rows_pad = pl.cdiv(rows_needed, tile_rows) * tile_rows
    n_pad = rows_pad * G

    x_flat = frames_actions.reshape(N, D)
    ids_flat = token_type_ids.reshape(N).astype(jnp.int32)
    if n_pad != N:
        x_flat = jnp.pad(x_flat, ((0, n_pad - N), (0, 0)))
        ids_flat = jnp.pad(ids_flat, (0, n_pad - N))      # pad id 0 = valid row

    x_g = x_flat.reshape(rows_pad, GD)                    # free reshape
    ids_g = ids_flat.reshape(rows_pad, G)
    emb_tiled = jnp.tile(emb_weight, (1, G))              # (T, G*D), ~T*GD*4 B

    kernel = functools.partial(_token_type_kernel, group=G, d_model=D,
                               num_types=T)

    out_g = pl.pallas_call(
        kernel,
        out_shape=jax.ShapeDtypeStruct((rows_pad, GD), frames_actions.dtype),
        grid_spec=pltpu.PrefetchScalarGridSpec(
            num_scalar_prefetch=0,
            grid=(rows_pad // tile_rows,),
            in_specs=[
                pl.BlockSpec((tile_rows, G), lambda i: (i, 0)),    # ids
                pl.BlockSpec((tile_rows, GD), lambda i: (i, 0)),   # x
                pl.BlockSpec((T, GD), lambda i: (0, 0)),           # emb table
            ],
            out_specs=pl.BlockSpec((tile_rows, GD), lambda i: (i, 0)),
        ),
        compiler_params=pltpu.CompilerParams(
            dimension_semantics=("parallel",)),
        input_output_aliases={1: 0},             # out aliases x (in-place +=)
        cost_estimate=pl.CostEstimate(
            flops=n_pad * D,
            transcendentals=0,
            bytes_accessed=2 * n_pad * D * itemsize + n_pad * 4),
    )(ids_g, x_g, emb_tiled)

    return out_g.reshape(rows_pad * G, D)[:N].reshape(B, S, D)


if __name__ == "__main__":
    # Module config (small, consistent with the forward).
    d_model = 32
    num_token_type = 2
    init_range = 0.1
    B, S = 2, 8

    key = jax.random.PRNGKey(0)
    k_emb, k_x, k_ids = jax.random.split(key, 3)

    # emb.weight.data.uniform_(-0.1, 0.1) analogue.
    emb_weight = jax.random.uniform(
        k_emb, (num_token_type, d_model), jnp.float32,
        minval=-init_range, maxval=init_range)

    frames_actions = jax.random.normal(k_x, (B, S, d_model), jnp.float32)
    token_type_ids = jax.random.randint(k_ids, (B, S), 0, num_token_type,
                                        dtype=jnp.int32)

    out = token_type_encoding(frames_actions, token_type_ids, emb_weight)
    out = jax.block_until_ready(out)

    # Pure-JAX reference: frames_actions + emb[token_type_ids].
    ref = frames_actions + emb_weight[token_type_ids]
    assert out.shape == frames_actions.shape
    assert jnp.allclose(out, ref, atol=1e-6, rtol=1e-6), "mismatch vs reference"

    print("KERNEL_OK")
</pallas_src>

<mosaic_0001>
module attributes {stable_mosaic.version = 11 : i64} {
  func.func @_token_type_kernel(%arg0: i32, %arg1: memref<4x4xi32, #tpu.memory_space<vmem>>, %arg2: memref<4x128xf32, #tpu.memory_space<vmem>>, %arg3: memref<2x128xf32, #tpu.memory_space<vmem>>, %arg4: memref<4x128xf32, #tpu.memory_space<vmem>>) attributes {dimension_semantics = [#tpu.dimension_semantics<parallel>], iteration_bounds = array<i64: 1>, scalar_prefetch = 0 : i64, scratch_operands = 0 : i64, tpu.core_type = #tpu.core_type<tc>, window_params = [{transform_indices = @transform_0, window_bounds = array<i64: 4, 4>}, {transform_indices = @transform_1, window_bounds = array<i64: 4, 128>}, {pipeline_mode = #tpu.pipeline_mode<synchronous>, transform_indices = @transform_2, window_bounds = array<i64: 2, 128>}, {transform_indices = @transform_3, window_bounds = array<i64: 4, 128>}]} {
    %c0 = arith.constant 0 : index
    %c0_0 = arith.constant 0 : index
    %0 = vector.load %arg1[%c0, %c0_0] : memref<4x4xi32, #tpu.memory_space<vmem>>, vector<4x4xi32>
    %1 = tpu.iota {dimensions = array<i32: 1>} : vector<4x128xi32>
    %2 = vector.extract_strided_slice %0 {offsets = [0, 0], sizes = [4, 1], strides = [1, 1]} : vector<4x4xi32> to vector<4x1xi32>
    %c32_i32 = arith.constant 32 : i32
    %3 = vector.broadcast %c32_i32 : i32 to vector<4x128xi32>
    %4 = arith.cmpi sge, %1, %3 : vector<4x128xi32>
    %5 = vector.extract_strided_slice %0 {offsets = [0, 1], sizes = [4, 1], strides = [1, 1]} : vector<4x4xi32> to vector<4x1xi32>
    %6 = vector.shape_cast %5 : vector<4x1xi32> to vector<4x1xi32>
    %7 = vector.broadcast %6 : vector<4x1xi32> to vector<4x128xi32>
    %8 = vector.shape_cast %2 : vector<4x1xi32> to vector<4x1xi32>
    %9 = vector.broadcast %8 : vector<4x1xi32> to vector<4x128xi32>
    %10 = arith.select %4, %7, %9 : vector<4x128xi1>, vector<4x128xi32>
    %c64_i32 = arith.constant 64 : i32
    %11 = vector.broadcast %c64_i32 : i32 to vector<4x128xi32>
    %12 = arith.cmpi sge, %1, %11 : vector<4x128xi32>
    %13 = vector.extract_strided_slice %0 {offsets = [0, 2], sizes = [4, 1], strides = [1, 1]} : vector<4x4xi32> to vector<4x1xi32>
    %14 = vector.shape_cast %13 : vector<4x1xi32> to vector<4x1xi32>
    %15 = vector.broadcast %14 : vector<4x1xi32> to vector<4x128xi32>
    %16 = arith.select %12, %15, %10 : vector<4x128xi1>, vector<4x128xi32>
    %c96_i32 = arith.constant 96 : i32
    %17 = vector.broadcast %c96_i32 : i32 to vector<4x128xi32>
    %18 = arith.cmpi sge, %1, %17 : vector<4x128xi32>
    %19 = vector.extract_strided_slice %0 {offsets = [0, 3], sizes = [4, 1], strides = [1, 1]} : vector<4x4xi32> to vector<4x1xi32>
    %20 = vector.shape_cast %19 : vector<4x1xi32> to vector<4x1xi32>
    %21 = vector.broadcast %20 : vector<4x1xi32> to vector<4x128xi32>
    %22 = arith.select %18, %21, %16 : vector<4x128xi1>, vector<4x128xi32>
    %c0_1 = arith.constant 0 : index
    %c0_2 = arith.constant 0 : index
    %23 = vector.load %arg3[%c0_1, %c0_2] : memref<2x128xf32, #tpu.memory_space<vmem>>, vector<1x128xf32>
    %c1_i32 = arith.constant 1 : i32
    %24 = vector.broadcast %c1_i32 : i32 to vector<4x128xi32>
    %25 = arith.cmpi eq, %22, %24 : vector<4x128xi32>
    %c1 = arith.constant 1 : index
    %c0_3 = arith.constant 0 : index
    %26 = vector.load %arg3[%c1, %c0_3] : memref<2x128xf32, #tpu.memory_space<vmem>>, vector<1x128xf32>
    %27 = vector.shape_cast %26 : vector<1x128xf32> to vector<1x128xf32>
    %28 = vector.broadcast %27 : vector<1x128xf32> to vector<4x128xf32>
    %29 = vector.shape_cast %23 : vector<1x128xf32> to vector<1x128xf32>
    %30 = vector.broadcast %29 : vector<1x128xf32> to vector<4x128xf32>
    %31 = arith.select %25, %28, %30 : vector<4x128xi1>, vector<4x128xf32>
    %c0_4 = arith.constant 0 : index
    %c0_5 = arith.constant 0 : index
    %32 = vector.load %arg2[%c0_4, %c0_5] : memref<4x128xf32, #tpu.memory_space<vmem>>, vector<4x128xf32>
    %33 = arith.addf %32, %31 : vector<4x128xf32>
    %c0_6 = arith.constant 0 : index
    %c0_7 = arith.constant 0 : index
    %34 = vector.load %arg4[%c0_6, %c0_7] : memref<4x128xf32, #tpu.memory_space<vmem>>, vector<4x128xf32>
    tpu.vector_store %arg4[%c0_6, %c0_7], %33 {strides = array<i32>} : memref<4x128xf32, #tpu.memory_space<vmem>>, vector<4x128xf32>,
    return
  }
  func.func @transform_0(%arg0: i32) -> (i32, i32) {
    %c0_i32 = arith.constant 0 : i32
    %c0_i32_0 = arith.constant 0 : i32
    return %arg0, %c0_i32 : i32, i32
  }
  func.func @transform_1(%arg0: i32) -> (i32, i32) {
    %c0_i32 = arith.constant 0 : i32
    %c0_i32_0 = arith.constant 0 : i32
    return %arg0, %c0_i32 : i32, i32
  }
  func.func @transform_2(%arg0: i32) -> (i32, i32) {
    %c0_i32 = arith.constant 0 : i32
    %c0_i32_0 = arith.constant 0 : i32
    %c0_i32_1 = arith.constant 0 : i32
    return %c0_i32, %c0_i32_0 : i32, i32
  }
  func.func @transform_3(%arg0: i32) -> (i32, i32) {
    %c0_i32 = arith.constant 0 : i32
    %c0_i32_0 = arith.constant 0 : i32
    return %arg0, %c0_i32 : i32, i32
  }
}

</mosaic_0001>

<bundles_post_ra>
// kernel: tile.9
= control target key start
LH: loop header
LB: loop body
LE: loop exit
PB: predicated region body
PF: predicated region fallthrough
CT: control target
= control target key end

     0   :  { %s30_s10 = smov 3  ;;  %s11_s11 = smov 3  ;;  %vm13_vm0 = vcmask 261120   ;;  %vm20_vm1 = vcmask 1048320   ;;  %vm27_vm2 = vcmask 785920   ;;  %vm34_vm3 = vcmask 523520   ;;  %s70_s0 = inlined_call_operand.vmem [shape: f32[2,4,32], index: 0, kind: input, shape index: {}]   ;;  %s71_s1 = inlined_call_operand.vmem [shape: f32[2,128], index: 1, kind: output, shape index: {}]  }
   0x1   :  { %v44_v0 = vld [vmem:[%s70_s0 + $0x4] sm:$0xf]  ;;  %v9_v1 = vld [vmem:[%s70_s0] sm:$0xf]  ;;  %s16_s0 = smov 3  ;;  %s23_s12 = smov 3 }
   0x2   :  { %8 = vst [vmem:[#allocation1 + $0x8] sm:$0xf] %v44_v0  ;;  %10 = vst [vmem:[#allocation1] sm:$0xf] %v9_v1  ;;  %s48_s13 = smov 96   ;;  %s49_s14 = smov 32  }
   0x3   :  { %s50_s15 = smov 64  }
   0x9   :  { %v17_v2 = vld [vmem:[#allocation1 + $0x3] ss:$8 sm:%s16_s0]   ;;  %v31_v3 = vld [vmem:[#allocation1 + $0x1] ss:$8 sm:%s30_s10]   ;;  %v12_v4 = vld [vmem:[#allocation1] ss:$8 sm:%s11_s11]  }
   0xa   :  { %18 = vrot.lane.b32.xlu0 %v17_v2, %s48_s13  ;;  %32 = vrot.lane.b32.xlu1 %v31_v3, %s49_s14  ;;  %v24_v5 = vld [vmem:[#allocation1 + $0x2] ss:$8 sm:%s23_s12]   ;;  %14 = vst.msk [vmem:[#allocation0] sm:$0x3] %vm13_vm0, %v12_v4  }
   0xe   :  { %25 = vrot.lane.b32.xlu0 %v24_v5, %s50_s15 }
  0x7c   :  { %v19_v6 = vpop.permute.xlu0 %18   ;;  %v33_v7 = vpop.permute.xlu1 %32  }
  0x7d   :  { %21 = vst.msk [vmem:[#allocation0] sm:$0x3] %vm20_vm1, %v19_v6  }
  0x80   :  { %v26_v8 = vpop.permute.xlu0 %25  }
  0x81   :  { %28 = vst.msk [vmem:[#allocation0] sm:$0x3] %vm27_vm2, %v26_v8  }
  0x82   :  { %35 = vst.msk [vmem:[#allocation0] sm:$0x3] %vm34_vm3, %v33_v7  }
  0x89   :  { %v40_v9 = vld [vmem:[#allocation0] sm:$0x3] }
  0x8a   :  { %43 = vst [vmem:[%s71_s1] sm:$0x3] %v40_v9 }

// kernel: token_type_encoding.1
= control target key start
LH: loop header
LB: loop body
LE: loop exit
PB: predicated region body
PF: predicated region fallthrough
CT: control target
= control target key end

     0   :  { %v65_v0 = vmov 1   ;;  %v66_v2 = vmov 2   ;;  %v67_v3 = vmov 0   ;;  %v68_v4 = vmov 3   ;;  %s104_s0 = inlined_call_operand.vmem [shape: s32[4,4], index: 0, kind: input, shape index: {}]   ;;  %s105_s2 = inlined_call_operand.vmem [shape: f32[2,128], index: 2, kind: input, shape index: {}]   ;;  %s106_s1 = inlined_call_operand.vmem [shape: f32[4,128], index: 1, kind: input, shape index: {}, may-alias: {1,3}]   ;;  %s107_s3 = inlined_call_operand.vmem [shape: f32[4,128], index: 3, kind: output, shape index: {}, may-alias: {1,3}]  }
   0x1   :  { %60 = vset.pattern.permute.xlu0 %v65_v0  ;;  %v14_v1 = vld [vmem:[%s104_s0] sm:$0xf]  ;;  %62 = vset.pattern.permute.xlu1 %v66_v2  ;;  %v15_v5 = vlaneseq }
   0x2   :  { %19 = vperm.xlu0 %60, %v14_v1   ;;  %27 = vperm.xlu1 %62, %v14_v1   ;;  %v55_v12 = vld [vmem:[%s105_s2] ss:$0 sm:$0xff]  ;;  %v54_v13 = vld [vmem:[%s105_s2 + $0x1] ss:$0 sm:$0xff] }
   0x3   :  { %v16_v6 = vand.u32 127, %v15_v5  ;;  %v47_v15 = vld [vmem:[%s106_s1] sm:$0xf] }
   0x5   :  { %vm17_vm0 = vcmp.ge.s32.totalorder %v16_v6, 32  ;;  %vm25_vm1 = vcmp.ge.s32.totalorder %v16_v6, 64  ;;  %vm30_vm2 = vcmp.ge.s32.totalorder %v16_v6, 96 }
   0x6   :  { %61 = vset.pattern.permute.xlu0 %v67_v3  ;;  %63 = vset.pattern.permute.xlu1 %v68_v4 }
   0x7   :  { %22 = vperm.xlu0 %61, %v14_v1   ;;  %32 = vperm.xlu1 %63, %v14_v1  }
   0xb   :  { %64 = vset.pattern.permute.xlu0 %v68_v4 }
  0x7d   :  { %v20_v7 = vpop.permute.xlu0 %19  ;;  %v28_v8 = vpop.permute.xlu1 %27 }
  0x82   :  { %v23_v9 = vpop.permute.xlu0 %22  ;;  %v33_v10 = vpop.permute.xlu1 %32 }
  0x83   :  { %v24_v11 = vsel %vm17_vm0, %v20_v7, %v23_v9 }
  0x84   :  { %v29_v14 = vsel %vm25_vm1, %v28_v8, %v24_v11 }
  0x85   :  { %v34_v16 = vsel %vm30_vm2, %v33_v10, %v29_v14 }
  0x86   :  { %vm36_vm3 = vcmp.eq.s32.totalorder %v34_v16, 1 }
  0x87   :  { %v46_v17 = vsel %vm36_vm3, %v54_v13, %v55_v12 }
  0x88   :  { %v48_v18 = vadd.f32 %v47_v15, %v46_v17 }
  0x8a   :  { %49 = vst [vmem:[%s107_s3] sm:$0xf] %v48_v18 }

</bundles_post_ra>
